<compile_context>
chip_gen: v6e
topology: v6e:2x2x1
jax: 0.10.0
libtpu: 0.0.40
codegen_flags: <defaults>
</compile_context>

<pallas_src>
import jax
import jax.numpy as jnp
from jax.experimental import pallas as pl
from jax.experimental.pallas import tpu as pltpu


def _vmem_capacity_bytes():
    """Physical VMEM capacity; conservative fallback (v7x per-TC) if unknown."""
    try:
        info = pltpu.get_tpu_info()
        cap = getattr(info, "vmem_capacity_bytes", None)
        if cap:
            return int(cap)
    except Exception:
        pass
    return 64 * 1024 * 1024


def _choose_tm(B, H, x_itemsize, out_cols, budget_bytes, target_steps=4):
    """Batch tile: big enough to hit the HBM roofline, small enough to leave
    >= target_steps grid steps (megacore sharding + pipelining) and fit the
    double-buffered VMEM budget.  Multiple of 16 (bf16 sublane packing)."""
    per_row = 2 * (H * x_itemsize + out_cols * 4)       # x tile + f32 out tile, x2 bufs
    resident = 2 * (H + 1) * out_cols * 4               # weight + bias (over-estimate)
    tm_vmem = (budget_bytes - resident) // max(per_row, 1)
    tm_steps = ((pl.cdiv(B, target_steps) + 15) // 16) * 16
    tm = min(tm_vmem, tm_steps, 8192)
    tm = (tm // 16) * 16
    if tm < 16:
        tm = min(B, 16)
    if tm >= B:
        return B                                        # full array -> always legal
    return tm


def _ssc_head_kernel(x_ref, wt_ref, b_ref, o_ref):
    # x: (TM, H) compute dtype; wt: (H, out) compute dtype (pre-transposed, so
    # the MXU RHS is already K-major / N-lane -- no hidden XLU transpose);
    # b: (1, out) f32.  Accumulate in f32, store f32.
    y = jnp.dot(x_ref[...], wt_ref[...], preferred_element_type=jnp.float32)
    o_ref[...] = y + b_ref[...]


def ssc_head(x, weight, bias, *, tm=None, compute_dtype=jnp.bfloat16):
    """x: (B, H); weight: (out, H) (PyTorch nn.Linear layout); bias: (out,).

    Returns f32 (B, out).  compute_dtype controls the MXU/DMA dtype of x and
    the weight; accumulation is always f32.
    """
    B, H = x.shape
    out_dim = weight.shape[0]

    # In a real model these casts fuse with the upstream producer / happen once
    # at param-load time; they are tiny relative to the kernel's x traffic.
    x_c = x.astype(compute_dtype)
    w_t = jnp.asarray(weight).T.astype(compute_dtype)          # (H, out_dim)
    b_r = jnp.asarray(bias).astype(jnp.float32).reshape(1, out_dim)

    budget = _vmem_capacity_bytes() * 3 // 4
    if tm is None:
        tm = _choose_tm(B, H, jnp.dtype(compute_dtype).itemsize, out_dim, budget)
    grid = (pl.cdiv(B, tm),)

    return pl.pallas_call(
        _ssc_head_kernel,
        out_shape=jax.ShapeDtypeStruct((B, out_dim), jnp.float32),
        grid_spec=pl.GridSpec(
            grid=grid,
            in_specs=[
                pl.BlockSpec((tm, H), lambda i: (i, 0)),          # x: tiled over batch
                pl.BlockSpec((H, out_dim), lambda i: (0, 0)),     # weight^T: resident
                pl.BlockSpec((1, out_dim), lambda i: (0, 0)),     # bias: resident
            ],
            out_specs=pl.BlockSpec((tm, out_dim), lambda i: (i, 0)),
        ),
        compiler_params=pltpu.CompilerParams(
            dimension_semantics=("parallel",),
            vmem_limit_bytes=int(budget),
        ),
    )(x_c, w_t, b_r)


if __name__ == "__main__":
    key = jax.random.PRNGKey(0)
    kx, kw, kb, kx2, kw2, kb2 = jax.random.split(key, 6)

    # Case 1: module-default small shapes (hidden=32, batch=8), f32 compute path
    # for a tight-tolerance correctness check (single grid step).
    hidden_size, batch = 32, 8
    weight = jax.random.normal(kw, (4, hidden_size), dtype=jnp.float32) * 0.1
    bias = jax.random.normal(kb, (4,), dtype=jnp.float32) * 0.1
    x = jax.random.normal(kx, (batch, hidden_size), dtype=jnp.float32)

    y = ssc_head(x, weight, bias, compute_dtype=jnp.float32)
    jax.block_until_ready(y)
    y_ref = x @ weight.T + bias
    assert y.shape == (batch, 4)
    assert jnp.allclose(y, y_ref, atol=1e-5, rtol=1e-5)

    # Case 2: default bf16 compute path, multi-step pipelined batch tiling with
    # a ragged last block (B=40, TM=16 -> grid of 3).
    hidden2, batch2 = 256, 40
    weight2 = jax.random.normal(kw2, (4, hidden2), dtype=jnp.float32) * 0.05
    bias2 = jax.random.normal(kb2, (4,), dtype=jnp.float32) * 0.05
    x2 = jax.random.normal(kx2, (batch2, hidden2), dtype=jnp.float32)

    y2 = ssc_head(x2, weight2, bias2, tm=16)  # bf16 DMA/MXU, f32 accumulate
    jax.block_until_ready(y2)
    y2_ref = x2 @ weight2.T + bias2
    assert y2.shape == (batch2, 4)
    assert jnp.allclose(y2, y2_ref, atol=3e-2, rtol=3e-2)   # bf16 input tolerance

    # Case 3: auto tile choice exercises the >=2-step policy (B=64 -> 4 steps).
    x3 = jax.random.normal(kx, (64, hidden2), dtype=jnp.float32)
    y3 = ssc_head(x3, weight2, bias2)
    jax.block_until_ready(y3)
    y3_ref = x3 @ weight2.T + bias2
    assert y3.shape == (64, 4)
    assert jnp.allclose(y3, y3_ref, atol=3e-2, rtol=3e-2)

    print("KERNEL_OK")
</pallas_src>

<mosaic_0001>
module attributes {stable_mosaic.version = 11 : i64} {
  func.func @_ssc_head_kernel(%arg0: i32, %arg1: memref<8x32xf32, #tpu.memory_space<vmem>>, %arg2: memref<32x4xf32, #tpu.memory_space<vmem>>, %arg3: memref<1x4xf32, #tpu.memory_space<vmem>>, %arg4: memref<8x4xf32, #tpu.memory_space<vmem>>) attributes {dimension_semantics = [#tpu.dimension_semantics<parallel>], iteration_bounds = array<i64: 1>, scalar_prefetch = 0 : i64, scratch_operands = 0 : i64, tpu.core_type = #tpu.core_type<tc>, window_params = [{transform_indices = @transform_0, window_bounds = array<i64: 8, 32>}, {pipeline_mode = #tpu.pipeline_mode<synchronous>, transform_indices = @transform_1, window_bounds = array<i64: 32, 4>}, {pipeline_mode = #tpu.pipeline_mode<synchronous>, transform_indices = @transform_2, window_bounds = array<i64: 1, 4>}, {transform_indices = @transform_3, window_bounds = array<i64: 8, 4>}]} {
    %c0 = arith.constant 0 : index
    %c0_0 = arith.constant 0 : index
    %0 = vector.load %arg1[%c0, %c0_0] : memref<8x32xf32, #tpu.memory_space<vmem>>, vector<8x32xf32>
    %c0_1 = arith.constant 0 : index
    %c0_2 = arith.constant 0 : index
    %1 = vector.load %arg2[%c0_1, %c0_2] : memref<32x4xf32, #tpu.memory_space<vmem>>, vector<32x4xf32>
    %cst = arith.constant dense<0.000000e+00> : vector<8x4xf32>
    %2 = tpu.matmul %0, %1, %cst {dimension_numbers = #tpu.dot_dimension_numbers<[1], [0], [0], [1], [0, 0, 1, 1], [], []>} : vector<8x32xf32>, vector<32x4xf32>, vector<8x4xf32> -> vector<8x4xf32>
    %c0_3 = arith.constant 0 : index
    %c0_4 = arith.constant 0 : index
    %3 = vector.load %arg3[%c0_3, %c0_4] : memref<1x4xf32, #tpu.memory_space<vmem>>, vector<1x4xf32>
    %4 = vector.broadcast %3 : vector<1x4xf32> to vector<8x4xf32>
    %5 = arith.addf %2, %4 : vector<8x4xf32>
    %c0_5 = arith.constant 0 : index
    %c0_6 = arith.constant 0 : index
    %6 = vector.load %arg4[%c0_5, %c0_6] : memref<8x4xf32, #tpu.memory_space<vmem>>, vector<8x4xf32>
    tpu.vector_store %arg4[%c0_5, %c0_6], %5 {strides = array<i32>} : memref<8x4xf32, #tpu.memory_space<vmem>>, vector<8x4xf32>,
    return
  }
  func.func @transform_0(%arg0: i32) -> (i32, i32) {
    %c0_i32 = arith.constant 0 : i32
    %c0_i32_0 = arith.constant 0 : i32
    return %arg0, %c0_i32 : i32, i32
  }
  func.func @transform_1(%arg0: i32) -> (i32, i32) {
    %c0_i32 = arith.constant 0 : i32
    %c0_i32_0 = arith.constant 0 : i32
    %c0_i32_1 = arith.constant 0 : i32
    return %c0_i32, %c0_i32_0 : i32, i32
  }
  func.func @transform_2(%arg0: i32) -> (i32, i32) {
    %c0_i32 = arith.constant 0 : i32
    %c0_i32_0 = arith.constant 0 : i32
    %c0_i32_1 = arith.constant 0 : i32
    return %c0_i32, %c0_i32_0 : i32, i32
  }
  func.func @transform_3(%arg0: i32) -> (i32, i32) {
    %c0_i32 = arith.constant 0 : i32
    %c0_i32_0 = arith.constant 0 : i32
    return %arg0, %c0_i32 : i32, i32
  }
}

</mosaic_0001>

<bundles_post_ra>
// kernel: tpu_custom_call.1
= control target key start
LH: loop header
LB: loop body
LE: loop exit
PB: predicated region body
PF: predicated region fallthrough
CT: control target
= control target key end

     0   :  { %v126_v0 = vmov 0.0   ;;  %vm127_vm0 = vmmov 0   ;;  %vm26_vm1 = vcmask 261120   ;;  %vm100_vm2 = vcmask 31744   ;;  %s169_s1 = inlined_call_operand.vmem [shape: f32[32,4], index: 1, kind: input, shape index: {}]   ;;  %s170_s0 = inlined_call_operand.vmem [shape: f32[8,32], index: 0, kind: input, shape index: {}]   ;;  %s171_s2 = inlined_call_operand.vmem [shape: f32[1,4], index: 2, kind: input, shape index: {}]   ;;  %s172_s3 = inlined_call_operand.vmem [shape: f32[8,4], index: 3, kind: output, shape index: {}]  }
   0x1   :  { %113 = vmatprep.subr.mxu0 %v126_v0  ;;  %v18_v1 = vld [vmem:[%s169_s1 + $0x18] sm:$0xff]  ;;  %v17_v2 = vld [vmem:[%s169_s1 + $0x10] sm:$0xff]  ;;  %121 = vmatprep.mubr.msk.f32.mxu0 %vm127_vm0, %v126_v0  ;;  %v16_v3 = vld [vmem:[%s169_s1 + $0x8] sm:$0xff] }
   0x2   :  { %114 = vmatpush3.msra.mxu0 %v18_v1  ;;  %v15_v4 = vld [vmem:[%s169_s1] sm:$0xff] }
   0x3   :  { %115 = vmatprep.subr.mxu0 %v126_v0  ;;  %v14_v5 = vld [vmem:[%s170_s0] sm:$0xff] }
   0x4   :  { %116 = vmatpush3.msra.mxu0 %v17_v2  ;;  %v106_v6 = vld [vmem:[%s171_s2] ss:$0 sm:$0xff] }
   0x5   :  { %117 = vmatprep.subr.mxu0 %v126_v0 }
   0x6   :  { %118 = vmatpush3.msra.mxu0 %v16_v3 }
   0x7   :  { %119 = vmatprep.subr.mxu0 %v126_v0 }
   0x8   :  { %120 = vmatpush3.msra.mxu0 %v15_v4 }
   0x9   :  { %122 = vmatmul.mubr.msk.f32.vlgmr.msra.gmra.mxu0 %vm26_vm1, %v14_v5 }
  0xc9   :  { %v96_v7 = vpop.f32.mrf.mxu0 }
  0xca   :  { %v97_v8 = vadd.f32 %v106_v6, %v96_v7 }
  0xcb   :  { %v123_v9 = vpop.f32.mrf.mxu0 }
  0xcc   :  { %101 = vst.msk [vmem:[%s172_s3] sm:$0xff] %vm100_vm2, %v97_v8 }

</bundles_post_ra>
